<compile_context>
chip_gen: v7x
topology: tpu7x:2x2x1
jax: 0.10.0
libtpu: 0.0.40
codegen_flags: <defaults>
</compile_context>

<pallas_src>
import functools

import jax
import jax.numpy as jnp
from jax.experimental import pallas as pl
from jax.experimental.pallas import tpu as pltpu

LABEL_SMOOTHING = 0.1
_MAX_TILE_N = 32768   # lane-dense tile width (multiple of 128)
_OUT_LANES = 128      # lane-dense width of each per-tile partial-sum output block


def _smoothed_ce_kernel(logits_ref, labels_ref, psum_ref, *, n_total, eps, needs_mask):
    """One grid step: smoothed-CE loss sum for a (C, T) lane-dense logits tile.

    logits_ref: (C, T) input dtype (f32 or bf16), labels_ref: (1, T) int32,
    psum_ref:   (1, _OUT_LANES) f32 -- this tile's loss sum broadcast across lanes.
    """
    i = pl.program_id(0)

    x = logits_ref[...].astype(jnp.float32)   # upcast in-register; all math stays f32
    y = labels_ref[...]                       # (1, T) int32
    C, T = x.shape

    # Numerically stable log-sum-exp over the (tiny) class axis on sublanes.
    m = jnp.max(x, axis=0, keepdims=True)                                  # (1, T)
    lse = jnp.log(jnp.sum(jnp.exp(x - m), axis=0, keepdims=True))          # (1, T)

    # Fused smoothed-target reduction:
    #   CE = (m + lse) - sum_c w_c * x_c,   w_c = eps/C + (1-eps)*[c == y]
    cls = jax.lax.broadcasted_iota(jnp.int32, (C, T), 0)
    w = jnp.where(cls == y, 1.0 - eps + eps / C, eps / C)                  # (C, T)
    per_sample = (m + lse) - jnp.sum(w * x, axis=0, keepdims=True)         # (1, T)

    def _store(vals):
        psum_ref[...] = jnp.broadcast_to(jnp.sum(vals, keepdims=True), psum_ref.shape)

    if needs_mask:
        # Ragged tail: build and apply the validity mask only on the LAST grid step.
        last = pl.num_programs(0) - 1

        @pl.when(i < last)
        def _full_tile():
            _store(per_sample)

        @pl.when(i == last)
        def _masked_tail():
            col = jax.lax.broadcasted_iota(jnp.int32, (1, T), 1) + i * T
            _store(jnp.where(col < n_total, per_sample, 0.0))
    else:
        _store(per_sample)


def classification_loss(logits, true_labels, penalty_weight=0.2):
    """logits: (B, A, C) float (f32 or bf16), true_labels: (B, A) int -> scalar f32 loss."""
    B, A, C = logits.shape
    N = B * A

    # (B, A, C) -> (N, C) is a free contiguous reshape; the .T relayout puts the long sample
    # axis on lanes (lane-dense kernel) and the tiny class axis on sublanes.
    lg = logits.reshape(N, C).T                         # (C, N), original dtype
    lb = true_labels.reshape(1, N).astype(jnp.int32)    # (1, N)

    tile_n = min(_MAX_TILE_N, pl.cdiv(N, 128) * 128)
    num_tiles = pl.cdiv(N, tile_n)
    needs_mask = (N % tile_n) != 0   # trace-time: skip masking machinery entirely if aligned

    kernel = functools.partial(
        _smoothed_ce_kernel, n_total=N, eps=LABEL_SMOOTHING, needs_mask=needs_mask)

    partials = pl.pallas_call(
        kernel,
        out_shape=jax.ShapeDtypeStruct((1, num_tiles * _OUT_LANES), jnp.float32),
        grid=(num_tiles,),
        in_specs=[
            pl.BlockSpec((C, tile_n), lambda i: (0, i)),
            pl.BlockSpec((1, tile_n), lambda i: (0, i)),
        ],
        out_specs=pl.BlockSpec((1, _OUT_LANES), lambda i: (0, i)),
        compiler_params=pltpu.CompilerParams(dimension_semantics=("parallel",)),
    )(lg, lb)

    # Each tile's loss sum is replicated across _OUT_LANES lanes; fold that out here.
    # NOTE: the PyTorch module's incorrect-probability penalty is computed but never added
    # to the returned value (final_loss = mean_loss), so it is not reproduced here.
    return jnp.sum(partials) / (float(_OUT_LANES) * N)


if __name__ == "__main__":
    key = jax.random.PRNGKey(0)
    B, A, C = 8, 14, 6  # batch, num_abnormalities, num_classes
    k_logits, k_labels = jax.random.split(key)
    logits = jax.random.normal(k_logits, (B, A, C), dtype=jnp.float32)
    labels = jax.random.randint(k_labels, (B, A), 0, C, dtype=jnp.int32)

    loss = jax.jit(classification_loss)(logits, labels)
    loss = jax.block_until_ready(loss)

    # Plain-JAX reference (same math as torch CrossEntropyLoss with label_smoothing=0.1).
    logp = jax.nn.log_softmax(logits.astype(jnp.float32), axis=-1)
    onehot = jax.nn.one_hot(labels, C, dtype=jnp.float32)
    eps = LABEL_SMOOTHING
    per = -((1.0 - eps) * jnp.sum(logp * onehot, axis=-1)
            + (eps / C) * jnp.sum(logp, axis=-1))
    ref = jnp.mean(per)

    assert jnp.allclose(loss, ref, rtol=1e-5, atol=1e-5), (float(loss), float(ref))
    print("KERNEL_OK")
</pallas_src>

<mosaic_0001>
module attributes {stable_mosaic.version = 11 : i64} {
  func.func @_smoothed_ce_kernel(%arg0: i32, %arg1: memref<6x128xf32, #tpu.memory_space<vmem>>, %arg2: memref<1x128xi32, #tpu.memory_space<vmem>>, %arg3: memref<1x128xf32, #tpu.memory_space<vmem>>) attributes {dimension_semantics = [#tpu.dimension_semantics<parallel>], iteration_bounds = array<i64: 1>, scalar_prefetch = 0 : i64, scratch_operands = 0 : i64, tpu.core_type = #tpu.core_type<tc>, window_params = [{transform_indices = @transform_0, window_bounds = array<i64: 6, 128>}, {transform_indices = @transform_1, window_bounds = array<i64: 1, 128>}, {transform_indices = @transform_2, window_bounds = array<i64: 1, 128>}]} {
    %c0 = arith.constant 0 : index
    %c0_0 = arith.constant 0 : index
    %0 = vector.load %arg1[%c0, %c0_0] : memref<6x128xf32, #tpu.memory_space<vmem>>, vector<6x128xf32>
    %c0_1 = arith.constant 0 : index
    %c0_2 = arith.constant 0 : index
    %1 = vector.load %arg2[%c0_1, %c0_2] : memref<1x128xi32, #tpu.memory_space<vmem>>, vector<1x128xi32>
    %cst = arith.constant dense<0xFF800000> : vector<128xf32>
    %2 = vector.multi_reduction <maximumf>, %0, %cst [0] : vector<6x128xf32> to vector<128xf32>
    %3 = vector.shape_cast %2 : vector<128xf32> to vector<1x128xf32>
    %4 = vector.broadcast %3 : vector<1x128xf32> to vector<6x128xf32>
    %5 = arith.subf %0, %4 : vector<6x128xf32>
    %6 = math.exp %5 : vector<6x128xf32>
    %cst_3 = arith.constant dense<0.000000e+00> : vector<128xf32>
    %7 = vector.multi_reduction <add>, %6, %cst_3 [0] : vector<6x128xf32> to vector<128xf32>
    %8 = vector.shape_cast %7 : vector<128xf32> to vector<1x128xf32>
    %9 = math.log %8 : vector<1x128xf32>
    %10 = tpu.iota {dimensions = array<i32: 0>} : vector<6x128xi32>
    %11 = vector.broadcast %1 : vector<1x128xi32> to vector<6x128xi32>
    %12 = arith.cmpi eq, %10, %11 : vector<6x128xi32>
    %cst_4 = arith.constant 0.916666686 : f32
    %cst_5 = arith.constant 0.0166666675 : f32
    %13 = vector.broadcast %cst_4 : f32 to vector<6x128xf32>
    %14 = vector.broadcast %cst_5 : f32 to vector<6x128xf32>
    %15 = arith.select %12, %13, %14 : vector<6x128xi1>, vector<6x128xf32>
    %16 = arith.addf %3, %9 : vector<1x128xf32>
    %17 = arith.mulf %15, %0 : vector<6x128xf32>
    %cst_6 = arith.constant dense<0.000000e+00> : vector<128xf32>
    %18 = vector.multi_reduction <add>, %17, %cst_6 [0] : vector<6x128xf32> to vector<128xf32>
    %19 = vector.shape_cast %18 : vector<128xf32> to vector<1x128xf32>
    %20 = arith.subf %16, %19 : vector<1x128xf32>
    %c0_i32 = arith.constant 0 : i32
    %21 = arith.cmpi slt, %arg0, %c0_i32 : i32
    %22 = arith.extui %21 : i1 to i32
    %c0_i32_7 = arith.constant 0 : i32
    %23 = arith.cmpi ne, %22, %c0_i32_7 : i32
    scf.if %23 {
      %27 = vector.shape_cast %20 : vector<1x128xf32> to vector<1x1x128xf32>
      %cst_10 = arith.constant dense<0.000000e+00> : vector<1xf32>
      %28 = vector.multi_reduction <add>, %27, %cst_10 [1, 2] : vector<1x1x128xf32> to vector<1xf32>
      %29 = vector.shape_cast %28 : vector<1xf32> to vector<1x1x1xf32>
      %30 = vector.extract %29[0, 0, 0] : f32 from vector<1x1x1xf32>
      %31 = vector.broadcast %30 : f32 to vector<1x1xf32>
      %32 = vector.shape_cast %31 : vector<1x1xf32> to vector<1x1xf32>
      %33 = vector.broadcast %32 : vector<1x1xf32> to vector<1x128xf32>
      %c0_11 = arith.constant 0 : index
      %c0_12 = arith.constant 0 : index
      %34 = vector.load %arg3[%c0_11, %c0_12] : memref<1x128xf32, #tpu.memory_space<vmem>>, vector<1x128xf32>
      tpu.vector_store %arg3[%c0_11, %c0_12], %33 {strides = array<i32>} : memref<1x128xf32, #tpu.memory_space<vmem>>, vector<1x128xf32>,
    } else {
    }
    %c0_i32_8 = arith.constant 0 : i32
    %24 = arith.cmpi eq, %arg0, %c0_i32_8 : i32
    %25 = arith.extui %24 : i1 to i32
    %c0_i32_9 = arith.constant 0 : i32
    %26 = arith.cmpi ne, %25, %c0_i32_9 : i32
    scf.if %26 {
      %27 = tpu.iota {dimensions = array<i32: 1>} : vector<1x128xi32>
      %c128_i32 = arith.constant 128 : i32
      %28 = arith.muli %arg0, %c128_i32 : i32
      %29 = vector.broadcast %28 : i32 to vector<1x128xi32>
      %30 = arith.addi %27, %29 : vector<1x128xi32>
      %c112_i32 = arith.constant 112 : i32
      %31 = vector.broadcast %c112_i32 : i32 to vector<1x128xi32>
      %32 = arith.cmpi slt, %30, %31 : vector<1x128xi32>
      %cst_10 = arith.constant 0.000000e+00 : f32
      %33 = vector.broadcast %cst_10 : f32 to vector<1x128xf32>
      %34 = arith.select %32, %20, %33 : vector<1x128xi1>, vector<1x128xf32>
      %35 = vector.shape_cast %34 : vector<1x128xf32> to vector<1x1x128xf32>
      %cst_11 = arith.constant dense<0.000000e+00> : vector<1xf32>
      %36 = vector.multi_reduction <add>, %35, %cst_11 [1, 2] : vector<1x1x128xf32> to vector<1xf32>
      %37 = vector.shape_cast %36 : vector<1xf32> to vector<1x1x1xf32>
      %38 = vector.extract %37[0, 0, 0] : f32 from vector<1x1x1xf32>
      %39 = vector.broadcast %38 : f32 to vector<1x1xf32>
      %40 = vector.shape_cast %39 : vector<1x1xf32> to vector<1x1xf32>
      %41 = vector.broadcast %40 : vector<1x1xf32> to vector<1x128xf32>
      %c0_12 = arith.constant 0 : index
      %c0_13 = arith.constant 0 : index
      %42 = vector.load %arg3[%c0_12, %c0_13] : memref<1x128xf32, #tpu.memory_space<vmem>>, vector<1x128xf32>
      tpu.vector_store %arg3[%c0_12, %c0_13], %41 {strides = array<i32>} : memref<1x128xf32, #tpu.memory_space<vmem>>, vector<1x128xf32>,
    } else {
    }
    return
  }
  func.func @transform_0(%arg0: i32) -> (i32, i32) {
    %c0_i32 = arith.constant 0 : i32
    %c0_i32_0 = arith.constant 0 : i32
    return %c0_i32, %arg0 : i32, i32
  }
  func.func @transform_1(%arg0: i32) -> (i32, i32) {
    %c0_i32 = arith.constant 0 : i32
    %c0_i32_0 = arith.constant 0 : i32
    return %c0_i32, %arg0 : i32, i32
  }
  func.func @transform_2(%arg0: i32) -> (i32, i32) {
    %c0_i32 = arith.constant 0 : i32
    %c0_i32_0 = arith.constant 0 : i32
    return %c0_i32, %arg0 : i32, i32
  }
}

</mosaic_0001>

<bundles_post_ra>
// kernel: classification_loss.1
= control target key start
LH: loop header
LB: loop body
LE: loop exit
PB: predicated region body
PF: predicated region fallthrough
CT: control target
= control target key end

     0   :  { %vm13_vm0 = vcmask 1045504   ;;  %v33_v8 = vlaneseq  ;;  %v104_v13 = vmov 0.016666668   ;;  %vm79_vm3 = vcmask 1040384   ;;  %s132_s0 = inlined_call_operand.vmem [shape: f32[6,112], index: 0, kind: input, shape index: {}]   ;;  %s133_s1 = inlined_call_operand.vmem [shape: s32[1,112], index: 1, kind: input, shape index: {}]   ;;  %s134_s2 = inlined_call_operand.vmem [shape: f32[1,128], index: 2, kind: output, shape index: {}]  }
   0x1   :  { %v11_v0 = vld [vmem:[%s132_s0] sm:$0x3f] }
   0x2   :  { %v14_v1 = vsel %vm13_vm0, %v11_v0, -inf  ;;  %v34_v11 = vshrl.u32 %v33_v8, 7  ;;  %v96_v12 = vld [vmem:[%s133_s1] ss:$0 sm:$0xff]  ;;  %v73_v31 = vand.u32 127, %v33_v8 }
   0x3   :  { %v15_v2 = vrot.slane %v14_v1, 4 }
   0x4   :  { %vm39_vm1 = vcmp.eq.s32.totalorder %v34_v11, %v96_v12  ;;  %vm77_vm2 = vcmp.lt.s32.totalorder %v73_v31, 112 }
   0x5   :  { %v16_v3 = vmax.f32 %v14_v1, %v15_v2  ;;  %v40_v14 = vsel %vm39_vm1, 0.9166667, %v104_v13 }
   0x6   :  { %v42_v15 = vmul.f32 %v40_v14, %v11_v0 }
   0x7   :  { %v17_v4 = vrot.slane %v16_v3, 2 }
   0x8   :  { %v43_v19 = vsel %vm13_vm0, %v42_v15, 0.0 }
   0x9   :  { %v18_v5 = vmax.f32 %v16_v3, %v17_v4  ;;  %v44_v21 = vrot.slane %v43_v19, 4 }
   0xb   :  { %v19_v6 = vrot.slane %v18_v5, 1  ;;  %v45_v24 = vadd.f32 %v44_v21, %v43_v19 }
   0xd   :  { %v20_v7 = vmax.f32 %v18_v5, %v19_v6  ;;  %v46_v27 = vrot.slane %v45_v24, 2 }
   0xf   :  { %v21_v9 = vsub.f32 %v11_v0, %v20_v7  ;;  %v47_v28 = vadd.f32 %v46_v27, %v45_v24 }
  0x11   :  { %v22_v10 = vmul.f32 1.442695, %v21_v9  ;;  %v48_v29 = vrot.slane %v47_v28, 1 }
  0x13   :  { %100 = vpow2.f32 %v22_v10  ;;  %v49_v33 = vadd.f32 %v48_v29, %v47_v28 }
  0x1d   :  { %v101_v16 = vpop.eup %100 }
  0x1e   :  { %v24_v17 = vsel %vm13_vm0, %v101_v16, 0.0 }
  0x1f   :  { %v25_v18 = vrot.slane %v24_v17, 4 }
  0x21   :  { %v26_v20 = vadd.f32 %v25_v18, %v24_v17 }
  0x23   :  { %v27_v22 = vrot.slane %v26_v20, 2 }
  0x25   :  { %v28_v23 = vadd.f32 %v27_v22, %v26_v20 }
  0x27   :  { %v29_v25 = vrot.slane %v28_v23, 1 }
  0x29   :  { %v30_v26 = vadd.f32 %v29_v25, %v28_v23 }
  0x2b   :  { %102 = vlog2.f32 %v30_v26 }
  0x35   :  { %v103_v30 = vpop.eup %102 }
  0x36   :  { %v32_v32 = vmul.f32 0.6931472, %v103_v30 }
  0x38   :  { %v41_v34 = vadd.f32 %v32_v32, %v20_v7 }
  0x3a   :  { %v50_v35 = vsub.f32 %v41_v34, %v49_v33 }
  0x3c   :  { %v78_v36 = vsel %vm77_vm2, %v50_v35, 0.0 }
  0x3d   :  { %v80_v37 = vsel %vm79_vm3, %v78_v36, 0.0 }
  0x3e   :  { %81 = vadd.xlane.f32.xlu0 %v80_v37 }
  0xcb   :  { %v82_v38 = vpop.xlane.xlu0 %81 }
  0xcc   :  { %v83_v39 = vrot.slane %v82_v38, 4 }
  0xce   :  { %v84_v40 = vadd.f32 %v83_v39, %v82_v38 }
  0xd0   :  { %v85_v41 = vrot.slane %v84_v40, 2 }
  0xd2   :  { %v86_v42 = vadd.f32 %v85_v41, %v84_v40 }
  0xd4   :  { %v87_v43 = vrot.slane %v86_v42, 1 }
  0xd6   :  { %v88_v44 = vadd.f32 %v87_v43, %v86_v42 }
  0xd8   :  { %97 = vpush %v88_v44 }
 0x109   :  { %s98_s0 = spop %97 }
 0x10a   :  { %v90_v45 = vstv %s98_s0 }
 0x10b   :  { %91 = vst [vmem:[%s134_s2] sm:$0x1] %v90_v45 }

</bundles_post_ra>
